<compile_context>
chip_gen: v7x
topology: tpu7x:2x2x1
jax: 0.10.0
libtpu: 0.0.40
codegen_flags: <defaults>
</compile_context>

<pallas_src>
import jax
import jax.numpy as jnp
from jax.experimental import pallas as pl
from jax.experimental.pallas import tpu as pltpu

VOCAB = 48
EMB_DIM = 200          # PyTorch-visible embedding width
EMB_PAD = 256          # lane-dense internal width (2 x 128 lanes)
NUM_TOKENS = 2         # forward always looks up exactly two concepts
PAD_TOKENS = 8         # sublane-dense output rows (one full sublane group)


def embedding_gather_kernel(idx_ref, table_ref, out_ref):
    # idx_ref:   SMEM int32[NUM_TOKENS]            -- raw row indices
    # table_ref: VMEM float32[VOCAB, EMB_PAD]      -- whole table, prologue-DMA'd
    # out_ref:   VMEM float32[PAD_TOKENS, EMB_PAD] -- lane/sublane-dense output
    #
    # In-kernel clamp on the scalar unit (free slot; removes the separate
    # clip HLO from the dispatch path).
    idx0 = jnp.clip(idx_ref[0], 0, VOCAB - 1)
    idx1 = jnp.clip(idx_ref[1], 0, VOCAB - 1)

    # Build an (PAD_TOKENS, VOCAB) one-hot selector: row 0 -> idx0, row 1 -> idx1,
    # rows 2..7 are all-zero (target = -1 never matches a lane id).
    token_row = jax.lax.broadcasted_iota(jnp.int32, (PAD_TOKENS, VOCAB), 0)
    lane_col = jax.lax.broadcasted_iota(jnp.int32, (PAD_TOKENS, VOCAB), 1)
    target = jnp.where(token_row == 0, idx0, jnp.where(token_row == 1, idx1, -1))
    onehot = (lane_col == target).astype(jnp.float32)

    # Single MXU pass: (8, 48) @ (48, 256) -> (8, 256); padded rows are zeros.
    out_ref[...] = jnp.dot(onehot, table_ref[...],
                           preferred_element_type=jnp.float32)


@jax.jit
def embedding_lookup(indices, table_padded):
    """indices: int32[NUM_TOKENS]; table_padded: f32[VOCAB, EMB_PAD]
       -> f32[NUM_TOKENS, EMB_DIM]"""
    out = pl.pallas_call(
        embedding_gather_kernel,
        out_shape=jax.ShapeDtypeStruct((PAD_TOKENS, EMB_PAD), jnp.float32),
        in_specs=[
            pl.BlockSpec(memory_space=pltpu.MemorySpace.SMEM),  # indices (scalars)
            pl.BlockSpec(memory_space=pltpu.MemorySpace.VMEM),  # whole table in VMEM
        ],
        out_specs=pl.BlockSpec(memory_space=pltpu.MemorySpace.VMEM),
    )(indices.astype(jnp.int32), table_padded)
    # Slice back to the PyTorch-equivalent shape (fuses inside the jit).
    return out[:NUM_TOKENS, :EMB_DIM]


class Embedding:
    """JAX/Pallas port of the PyTorch `Embedding` module."""

    def __init__(self, concepts_dict, key):
        self.concepts = concepts_dict
        # nn.Embedding(48, 200) default init: weight ~ N(0, 1).
        w = jax.random.normal(key, (VOCAB, EMB_DIM), dtype=jnp.float32)
        self.weight = w  # PyTorch-equivalent (48, 200) view, for reference use
        # Lane-padded (48, 256) copy kept device-resident; padding columns are 0.
        self.weight_padded = jnp.pad(w, ((0, 0), (0, EMB_PAD - EMB_DIM)))
        # Cache of device-resident index arrays keyed by concept pair, so
        # repeated generations don't re-upload 8 bytes from host every call.
        self._idx_cache = {}

    def forward(self, x):
        con1, con2 = x
        idx = self._idx_cache.get((con1, con2))
        if idx is None:
            # Concept-name -> index mapping is host-side Python (dict lookup).
            idx = jnp.array(
                [self.concepts[con1], self.concepts[con2]], dtype=jnp.int32
            )
            self._idx_cache[(con1, con2)] = idx
        return embedding_lookup(idx, self.weight_padded)

    __call__ = forward


if __name__ == "__main__":
    key = jax.random.PRNGKey(0)

    # Deterministic synthetic concepts dict: 48 named concepts -> indices.
    concepts_dict = {f"concept_{i}": i for i in range(VOCAB)}

    model = Embedding(concepts_dict, key)

    x = ("concept_3", "concept_17")
    emb = model(x)
    emb = jax.block_until_ready(emb)

    # Second call exercises the cached-index / compiled path.
    emb2 = jax.block_until_ready(model(x))

    # Sanity check against the pure-JAX reference gather on the unpadded weight.
    idx = jnp.array([concepts_dict[x[0]], concepts_dict[x[1]]], dtype=jnp.int32)
    ref = jnp.take(model.weight, idx, axis=0)
    assert emb.shape == (NUM_TOKENS, EMB_DIM)
    assert emb.dtype == jnp.float32
    assert jnp.allclose(emb, ref, rtol=1e-5, atol=1e-5), \
        "Pallas embedding lookup mismatch vs reference"
    assert jnp.allclose(emb2, ref, rtol=1e-5, atol=1e-5)

    print("KERNEL_OK")
</pallas_src>

<mosaic_0001>
module attributes {stable_mosaic.version = 11 : i64} {
  func.func @embedding_gather_kernel(%arg0: memref<2xi32, #tpu.memory_space<smem>>, %arg1: memref<48x256xf32, #tpu.memory_space<vmem>>, %arg2: memref<8x256xf32, #tpu.memory_space<vmem>>) attributes {dimension_semantics = [], scalar_prefetch = 0 : i64, scratch_operands = 0 : i64, tpu.core_type = #tpu.core_type<tc>} {
    %c0 = arith.constant 0 : index
    %0 = memref.load %arg0[%c0] : memref<2xi32, #tpu.memory_space<smem>>
    %c0_i32 = arith.constant 0 : i32
    %c47_i32 = arith.constant 47 : i32
    %1 = arith.maxsi %c0_i32, %0 : i32
    %2 = arith.minsi %c47_i32, %1 : i32
    %c1 = arith.constant 1 : index
    %3 = memref.load %arg0[%c1] : memref<2xi32, #tpu.memory_space<smem>>
    %c0_i32_0 = arith.constant 0 : i32
    %c47_i32_1 = arith.constant 47 : i32
    %4 = arith.maxsi %c0_i32_0, %3 : i32
    %5 = arith.minsi %c47_i32_1, %4 : i32
    %6 = tpu.iota {dimensions = array<i32: 0>} : vector<8x48xi32>
    %7 = tpu.iota {dimensions = array<i32: 1>} : vector<8x48xi32>
    %c0_i32_2 = arith.constant 0 : i32
    %8 = vector.broadcast %c0_i32_2 : i32 to vector<8x48xi32>
    %9 = arith.cmpi eq, %6, %8 : vector<8x48xi32>
    %c1_i32 = arith.constant 1 : i32
    %10 = vector.broadcast %c1_i32 : i32 to vector<8x48xi32>
    %11 = arith.cmpi eq, %6, %10 : vector<8x48xi32>
    %c-1_i32 = arith.constant -1 : i32
    %12 = vector.broadcast %5 : i32 to vector<8x48xi32>
    %13 = vector.broadcast %c-1_i32 : i32 to vector<8x48xi32>
    %14 = arith.select %11, %12, %13 : vector<8x48xi1>, vector<8x48xi32>
    %15 = vector.broadcast %2 : i32 to vector<8x48xi32>
    %16 = arith.select %9, %15, %14 : vector<8x48xi1>, vector<8x48xi32>
    %17 = arith.cmpi eq, %7, %16 : vector<8x48xi32>
    %18 = arith.extui %17 : vector<8x48xi1> to vector<8x48xi32>
    %19 = arith.sitofp %18 : vector<8x48xi32> to vector<8x48xf32>
    %c0_3 = arith.constant 0 : index
    %c0_4 = arith.constant 0 : index
    %20 = vector.load %arg1[%c0_3, %c0_4] : memref<48x256xf32, #tpu.memory_space<vmem>>, vector<48x256xf32>
    %cst = arith.constant dense<0.000000e+00> : vector<8x256xf32>
    %21 = tpu.matmul %19, %20, %cst {dimension_numbers = #tpu.dot_dimension_numbers<[1], [0], [0], [1], [0, 0, 1, 1], [], []>} : vector<8x48xf32>, vector<48x256xf32>, vector<8x256xf32> -> vector<8x256xf32>
    %c0_5 = arith.constant 0 : index
    %c0_6 = arith.constant 0 : index
    %22 = vector.load %arg2[%c0_5, %c0_6] : memref<8x256xf32, #tpu.memory_space<vmem>>, vector<8x256xf32>
    tpu.vector_store %arg2[%c0_5, %c0_6], %21 {strides = array<i32>} : memref<8x256xf32, #tpu.memory_space<vmem>>, vector<8x256xf32>,
    return
  }
}

</mosaic_0001>

<bundles_post_ra>
// kernel: embedding_lookup.1
= control target key start
LH: loop header
LB: loop body
LE: loop exit
PB: predicated region body
PF: predicated region fallthrough
CT: control target
= control target key end

     0   :  { %7 = vsyncpa [#allocation4], 0  ;;  %s279_s0 = inlined_call_operand.hbm [shape: s32[2], index: 0, kind: input, shape index: {}]   ;;  %s280_s1 = inlined_call_operand.hbm [shape: f32[48,256], index: 1, kind: input, shape index: {}]   ;;  %s281_s2 = inlined_call_operand.vmem [shape: f32[8,256], index: 2, kind: output, shape index: {}]  }
   0x1   :  { %8 = vsyncpa [#allocation3], 0  ;;  %s188_s11 = scalar_lea.hbm %s279_s0, 16 }
   0x2   :  { %p189_p0 = scmp.ne.s32.totalorder %s279_s0, %s188_s11  ;;  %p192_p1 = scmp.lt.u32.totalorder %s188_s11, %s279_s0 }
   0x4   :  { %p194_p2 = pnand %p192_p1, %p189_p0 }
   0x6   :  { %197 = shalt.err (!%p194_p2)
}
   0x7   :  { %s224_s16 = smov [#allocation2]   ;;  %s225_s19 = smov [#allocation5]  }
   0x8   :  { %16 = dma.hbm_to_smem %s279_s0, 16, %s224_s16, [#allocation4]  }
   0x9   :  { %s22_s20 = sshll.u32 %s225_s19, 4  ;;  %s198_s23 = scalar_lea.hbm %s280_s1, 1536  ;;  %s23_s20 = int_to_ptr.vmem [resolvable:$true] %s22_s20 }
   0xa   :  { %p199_p3 = scmp.ne.s32.totalorder %s280_s1, %s198_s23  ;;  %p202_p4 = scmp.lt.u32.totalorder %s198_s23, %s280_s1 }
   0xc   :  { %p204_p5 = pnand %p202_p4, %p199_p3 }
   0xe   :  { %207 = shalt.err (!%p204_p5)
}
   0xf   :  { %s208_s28 = scalar_lea.vmem %s23_s20, 1536  ;;  %p213_p7 = scmp.lt.s32.totalorder %s23_s20, %s23_s20 }
  0x10   :  { %p209_p6 = scmp.ne.s32.totalorder %s23_s20, %s208_s28  ;;  %p214_p8 = scmp.lt.s32.totalorder %s208_s28, %s208_s28 }
  0x12   :  { %p215_p9 = por %p214_p8, %p213_p7 }
  0x14   :  { %p216_p10 = pnand %p215_p9, %p209_p6 }
  0x16   :  { %219 = shalt.err (!%p216_p10)
}
  0x17   :  { %s226_s0 = smov 256   ;;  %s227_s29 = smov 16  }
  0x18   :  { %28 = dma.hbm_to_vmem [thread:$0]  %s280_s1, 1536, %s23_s20, [#allocation3], %s226_s0, %s226_s0, %s227_s29  }
  0x19   :  { %220 = dma.done.wait [#allocation4], 16  }
  0x1a   :  { %221 = vsyncadd [#allocation4], 4294967280 }
  0x1b   :  { %222 = dma.done.wait [#allocation3], 1536  }
  0x1c   :  { %223 = vsyncadd [#allocation3], 4294965760 }
  0x1d   :  { %35 = sfence }
  0x1e   :  { %v60_v0 = vld [vmem:[#allocation5 + $0x8] sm:$0xff]  ;;  %v62_v1 = vld [vmem:[#allocation5 + $0x18] sm:$0xff]  ;;  %v59_v2 = vld [vmem:[#allocation5] sm:$0xff]  ;;  %s268_s4 = sld [smem:[#allocation2]]  ;;  %s159_s5 = sld [smem:[#allocation2 + $0x1]]  ;;  %v228_v7 = vmov 0.0   ;;  %v46_v14 = vlaneseq }
  0x1f   :  { %v171_v3 = vpack.c.bf16 %v62_v1, %v60_v0  ;;  %v61_v4 = vld [vmem:[#allocation5 + $0x10] sm:$0xff]  ;;  %v64_v5 = vld [vmem:[#allocation5 + $0x28] sm:$0xff]  ;;  %v66_v6 = vld [vmem:[#allocation5 + $0x38] sm:$0xff]  ;;  %139 = vmatprep.mubr.f32.mxu0 %v228_v7  ;;  %vm71_vm2 = vcmask 392192  }
  0x20   :  { %v173_v8 = vpack.c.bf16 %v61_v4, %v59_v2  ;;  %v175_v9 = vpack.c.bf16 %v66_v6, %v64_v5  ;;  %v63_v10 = vld [vmem:[#allocation5 + $0x20] sm:$0xff]  ;;  %v65_v11 = vld [vmem:[#allocation5 + $0x30] sm:$0xff]  ;;  %v68_v12 = vld [vmem:[#allocation5 + $0x48] sm:$0xff]  ;;  %v47_v19 = vshrl.u32 %v46_v14, 7  ;;  %v49_v21 = vand.u32 127, %v46_v14 }
  0x21   :  { %172 = vmatprep.subr.bf16.mxu0 %v171_v3  ;;  %v70_v13 = vld [vmem:[#allocation5 + $0x58] sm:$0xff]  ;;  %v177_v15 = vpack.c.bf16 %v65_v11, %v63_v10  ;;  %v67_v17 = vld [vmem:[#allocation5 + $0x40] sm:$0xff]  ;;  %v69_v18 = vld [vmem:[#allocation5 + $0x50] sm:$0xff] }
  0x22   :  { %174 = vmatpush1.bf16.msra.mxu0 %v173_v8  ;;  %v179_v16 = vpack.c.bf16 %v70_v13, %v68_v12  ;;  %v181_v20 = vpack.c.bf16 %v69_v18, %v67_v17  ;;  %vm51_vm0 = vcmp.eq.s32.totalorder %v47_v19, 1  ;;  %vm50_vm1 = vcmp.eq.s32.totalorder %v47_v19, 0 }
  0x23   :  { %176 = vmatprep.subr.bf16.mxu0 %v175_v9 }
  0x24   :  { %p37_p11 = scmp.gt.s32.totalorder %s268_s4, 0  ;;  %p154_p12 = scmp.lt.s32.totalorder %s268_s4, 47 }
  0x25   :  { %p42_p13 = scmp.gt.s32.totalorder %s159_s5, 0  ;;  %p160_p0 = scmp.lt.s32.totalorder %s159_s5, 47 }
  0x26   :  { %178 = vmatpush1.bf16.msra.mxu0 %v177_v15  ;;  %s283_s4 = smov (!%p37_p11, %s268_s4), 0 }
  0x27   :  { %180 = vmatprep.subr.bf16.mxu0 %v179_v16  ;;  %s285_s5 = smov (!%p42_p13, %s159_s5), 0  ;;  %s287_s4 = smov (!%p154_p12, %s283_s4), 47 }
  0x28   :  { %s289_s5 = smov (!%p160_p0, %s285_s5), 47  ;;  %v54_v22 = vstv %s287_s4 }
  0x29   :  { %v52_v23 = vstv %s289_s5 }
  0x2a   :  { %182 = vmatpush1.bf16.msra.mxu0 %v181_v20  ;;  %v53_v24 = vsel %vm51_vm0, %v52_v23, 4294967295 }
  0x2b   :  { %v55_v25 = vsel %vm50_vm1, %v54_v22, %v53_v24 }
  0x2c   :  { %vm56_vm3 = vcmp.eq.s32.totalorder %v49_v21, %v55_v25 }
  0x2d   :  { %v165_v26 = vsel %vm56_vm3, 1.0, %v228_v7 }
  0x2e   :  { %166 = vmatmul.mubr.msk.f32.vlgmr.msra.gmra.mrb[0].mxu0 %vm71_vm2, %v165_v26 }
 0x101   :  { %v141_v27 = vpop.f32.mrb[0].mxu0 }
 0x102   :  { %146 = vst [vmem:[%s281_s2] sm:$0xff] %v141_v27  ;;  %v143_v28 = vpop.f32.mrb[1].mxu0 }
 0x103   :  { %147 = vst [vmem:[%s281_s2 + $0x8] sm:$0xff] %v143_v28 }
 0x104   :  { %152 = vsyncpa [#allocation3], 1 }
 0x105   :  { %153 = vsyncpa [#allocation4], 1 }

</bundles_post_ra>
